<compile_context>
chip_gen: v5e
topology: v5e:2x2
jax: 0.10.0
libtpu: 0.0.40
codegen_flags: <defaults>
</compile_context>

<pallas_src>
import jax
import jax.numpy as jnp
from jax.experimental import pallas as pl
from jax.experimental.pallas import tpu as pltpu


def _linear_kernel(x_ref, wt_ref, b_ref, o_ref):
    # x_ref:  [TM, H]  (VMEM, streamed / double-buffered)
    # wt_ref: [H, T]   (VMEM, resident — weight already transposed in wrapper)
    # b_ref:  [1, T]   (VMEM, resident)
    # o_ref:  [TM, T]
    # MXU contraction with f32 accumulation; no [TM, H] temporary is ever
    # materialized, so per-step VMEM is just the (double-buffered) x tile.
    acc = jnp.dot(x_ref[...], wt_ref[...], preferred_element_type=jnp.float32)
    o_ref[...] = (acc + b_ref[...].astype(jnp.float32)).astype(o_ref.dtype)


def _vmem_capacity_bytes():
    try:
        return int(pltpu.get_tpu_info().vmem_capacity_bytes)
    except Exception:
        return 64 << 20          # conservative (v7x-sized) fallback


def _sublane_multiple(dtype):
    # Packed min-tile second-minor multiple: 8 for 4-byte, 16 for 2-byte,
    # 32 for 1-byte element types.
    itemsize = jnp.dtype(dtype).itemsize
    return max(8, 32 // max(itemsize, 1))


def _round_up(v, mult):
    return -(-v // mult) * mult


def _pick_tile_rows(m, row_bytes, per_buffer_bytes, sublane):
    """Rows per grid step.

    Sized so one x tile fits the per-buffer VMEM budget (the pipeline
    double-buffers it), rounded to a dtype-aware sublane multiple, capped so
    enough grid steps remain for pipelining, and — when the whole input would
    fit in a single tile — split into >= 2 tiles so the parallel grid axis can
    shard across v7x's two TensorCores.
    """
    tm = per_buffer_bytes // max(row_bytes, 1)
    tm = min(tm, 8192)                       # keep several steps for pipelining
    tm = max(sublane, (tm // sublane) * sublane)
    if tm >= m:
        if m >= 2 * sublane:
            # Split into two row tiles (rounded up to the sublane multiple);
            # guaranteed < m when m >= 2*sublane, so grid_m == 2.
            half = _round_up(-(-m // 2), sublane)
            return min(half, m)
        return m                              # tiny input: one full-dim block
    return tm


def time_log_model_forward(x, weight, bias):
    """x: [..., hidden]; weight: [time_size, hidden]; bias: [time_size].
    Returns x @ weight.T + bias (same semantics as nn.Linear)."""
    orig_shape = x.shape
    hidden = orig_shape[-1]
    time_size = weight.shape[0]

    x2d = x.reshape(-1, hidden)                                  # [M, H]
    m = x2d.shape[0]
    itemsize = jnp.dtype(x.dtype).itemsize
    sublane = _sublane_multiple(x.dtype)

    vmem_cap = _vmem_capacity_bytes()
    # Bandwidth-aware x-tile budget: big tiles on every generation (most
    # important on v7x where HBM drains a small tile in ~1 us and the fixed
    # per-step overhead would dominate), capped at 1/4 of physical VMEM so the
    # double-buffered stream + weight + output fit with headroom.
    per_buf = max(min(vmem_cap // 4, 16 << 20), 1 << 20)
    tm = _pick_tile_rows(m, hidden * itemsize, per_buf, sublane)
    grid_m = pl.cdiv(m, tm)

    # Raised scoped-VMEM limit: ~48 MiB on v7x (64 MiB physical), 64 MiB on
    # v5e/v6e (128 MiB physical).
    vmem_limit = int(max(32 << 20, min((3 * vmem_cap) // 4, 64 << 20)))
    compiler_params = pltpu.CompilerParams(
        dimension_semantics=("parallel",),    # shard row tiles on v7x's 2 TCs
        vmem_limit_bytes=vmem_limit)

    cost = pl.CostEstimate(
        flops=2 * m * hidden * time_size,
        transcendentals=0,
        bytes_accessed=itemsize * (m * hidden + m * time_size)
        + jnp.dtype(weight.dtype).itemsize * time_size * hidden
        + jnp.dtype(bias.dtype).itemsize * time_size)

    # One-time, near-free wrapper-side transpose so the kernel contracts
    # ((1,),(0,)) and Mosaic never re-orients the RHS tile per grid step.
    w_t = jnp.transpose(weight)                                  # [H, T]
    b2d = bias.reshape(1, time_size)                             # [1, T]

    out = pl.pallas_call(
        _linear_kernel,
        out_shape=jax.ShapeDtypeStruct((m, time_size), x.dtype),
        grid_spec=pltpu.PrefetchScalarGridSpec(
            num_scalar_prefetch=0,
            grid=(grid_m,),
            in_specs=[
                pl.BlockSpec((tm, hidden), lambda i: (i, 0)),        # streamed
                pl.BlockSpec((hidden, time_size), lambda i: (0, 0)),  # resident
                pl.BlockSpec((1, time_size), lambda i: (0, 0)),       # resident
            ],
            out_specs=pl.BlockSpec((tm, time_size), lambda i: (i, 0)),
        ),
        compiler_params=compiler_params,
        cost_estimate=cost,
    )(x2d, w_t, b2d)

    return out.reshape(*orig_shape[:-1], time_size)


def init_params(key, hidden, time_size=1, dtype=jnp.float32):
    # Deterministic init mimicking nn.Linear default: U(-1/sqrt(hidden), 1/sqrt(hidden))
    kw, kb = jax.random.split(key)
    bound = 1.0 / (hidden ** 0.5)
    weight = jax.random.uniform(kw, (time_size, hidden), dtype, -bound, bound)
    bias = jax.random.uniform(kb, (time_size,), dtype, -bound, bound)
    return weight, bias


if __name__ == "__main__":
    batch, seq, hidden, time_size = 2, 8, 32, 1

    key = jax.random.PRNGKey(0)
    kx, kp = jax.random.split(key)
    x = jax.random.normal(kx, (batch, seq, hidden), jnp.float32)

    # Default module config: time_size = 1.
    weight, bias = init_params(kp, hidden, time_size)
    y = jax.block_until_ready(time_log_model_forward(x, weight, bias))
    ref = x @ weight.T + bias
    assert y.shape == (batch, seq, time_size)
    assert jnp.allclose(y, ref, atol=1e-5, rtol=1e-5)

    # General time_size > 1 config, same nn.Linear semantics.
    weight4, bias4 = init_params(kp, hidden, 4)
    y4 = jax.block_until_ready(time_log_model_forward(x, weight4, bias4))
    ref4 = x @ weight4.T + bias4
    assert y4.shape == (batch, seq, 4)
    assert jnp.allclose(y4, ref4, atol=1e-4, rtol=1e-4)

    print("KERNEL_OK")
</pallas_src>

<mosaic_0001>
module attributes {stable_mosaic.version = 11 : i64} {
  func.func @_linear_kernel(%arg0: i32, %arg1: memref<8x32xf32, #tpu.memory_space<vmem>>, %arg2: memref<32x1xf32, #tpu.memory_space<vmem>>, %arg3: memref<1x1xf32, #tpu.memory_space<vmem>>, %arg4: memref<8x1xf32, #tpu.memory_space<vmem>>) attributes {dimension_semantics = [#tpu.dimension_semantics<parallel>], iteration_bounds = array<i64: 2>, scalar_prefetch = 0 : i64, scratch_operands = 0 : i64, tpu.core_type = #tpu.core_type<tc>, window_params = [{transform_indices = @transform_0, window_bounds = array<i64: 8, 32>}, {pipeline_mode = #tpu.pipeline_mode<synchronous>, transform_indices = @transform_1, window_bounds = array<i64: 32, 1>}, {pipeline_mode = #tpu.pipeline_mode<synchronous>, transform_indices = @transform_2, window_bounds = array<i64: 1, 1>}, {transform_indices = @transform_3, window_bounds = array<i64: 8, 1>}]} {
    %c0 = arith.constant 0 : index
    %c0_0 = arith.constant 0 : index
    %0 = vector.load %arg1[%c0, %c0_0] : memref<8x32xf32, #tpu.memory_space<vmem>>, vector<8x32xf32>
    %c0_1 = arith.constant 0 : index
    %c0_2 = arith.constant 0 : index
    %1 = vector.load %arg2[%c0_1, %c0_2] : memref<32x1xf32, #tpu.memory_space<vmem>>, vector<32x1xf32>
    %cst = arith.constant dense<0.000000e+00> : vector<8x1xf32>
    %2 = tpu.matmul %0, %1, %cst {dimension_numbers = #tpu.dot_dimension_numbers<[1], [0], [0], [1], [0, 0, 1, 1], [], []>} : vector<8x32xf32>, vector<32x1xf32>, vector<8x1xf32> -> vector<8x1xf32>
    %c0_3 = arith.constant 0 : index
    %c0_4 = arith.constant 0 : index
    %3 = vector.load %arg3[%c0_3, %c0_4] : memref<1x1xf32, #tpu.memory_space<vmem>>, vector<1x1xf32>
    %4 = vector.broadcast %3 : vector<1x1xf32> to vector<8x1xf32>
    %5 = arith.addf %2, %4 : vector<8x1xf32>
    %c0_5 = arith.constant 0 : index
    %c0_6 = arith.constant 0 : index
    %6 = vector.load %arg4[%c0_5, %c0_6] : memref<8x1xf32, #tpu.memory_space<vmem>>, vector<8x1xf32>
    tpu.vector_store %arg4[%c0_5, %c0_6], %5 {strides = array<i32>} : memref<8x1xf32, #tpu.memory_space<vmem>>, vector<8x1xf32>,
    return
  }
  func.func @transform_0(%arg0: i32) -> (i32, i32) {
    %c0_i32 = arith.constant 0 : i32
    %c0_i32_0 = arith.constant 0 : i32
    return %arg0, %c0_i32 : i32, i32
  }
  func.func @transform_1(%arg0: i32) -> (i32, i32) {
    %c0_i32 = arith.constant 0 : i32
    %c0_i32_0 = arith.constant 0 : i32
    %c0_i32_1 = arith.constant 0 : i32
    return %c0_i32, %c0_i32_0 : i32, i32
  }
  func.func @transform_2(%arg0: i32) -> (i32, i32) {
    %c0_i32 = arith.constant 0 : i32
    %c0_i32_0 = arith.constant 0 : i32
    %c0_i32_1 = arith.constant 0 : i32
    return %c0_i32, %c0_i32_0 : i32, i32
  }
  func.func @transform_3(%arg0: i32) -> (i32, i32) {
    %c0_i32 = arith.constant 0 : i32
    %c0_i32_0 = arith.constant 0 : i32
    return %arg0, %c0_i32 : i32, i32
  }
}

</mosaic_0001>

<bundles_post_ra>
// kernel: tpu_custom_call.1
= control target key start
LH: loop header
LB: loop body
LE: loop exit
PB: predicated region body
PF: predicated region fallthrough
CT: control target
= control target key end

     0   :  { %s306_s14 = smov 0   ;;  %s335_s0 = inlined_call_operand.vmem [shape: f32[16,32], index: 0, kind: input, shape index: {}]   ;;  %s336_s1 = inlined_call_operand.vmem [shape: f32[32,1], index: 1, kind: input, shape index: {}]   ;;  %s337_s2 = inlined_call_operand.<no memory space> [shape: f32[1,1], index: 2, kind: input, shape index: {}]   ;;  %s338_s3 = inlined_call_operand.vmem [shape: f32[16,1], index: 3, kind: output, shape index: {}]  }
   0x1   :  { %v8_v0 = vstv %s337_s2 }
   0x2   :  { %9 = vst [vmem:[#allocation2] sm:$0x1] %v8_v0 }
   0x3 LB: > { %s256_s15 = sadd.s32 4294967295, %s281_s14   ;;  %p260_p0 = scmp.ge.s32.totalorder %s281_s14, 1  ;;  %s281_s14 = sphi %s306_s14, %s15_s14  }
   0x4   : > { %p138_p1 = scmp.lt.s32.totalorder %s281_s14, 3 }
   0x6   : > { %p139_p2 = pnand %p260_p0, %p138_p1 }
   0x7   : > { %p160_p3 = scmp.lt.s32.totalorder (!%p139_p2), %s256_s15, 1 }
   0x8   : > { %142 = sbr.rel (%p139_p2) target bundleno = 150 (0x96), region = 32 }
   0xd   : > { %v172_v1 = vld [vmem:[%s336_s1 + $0x18] sm:$0xff]  ;;  %v171_v2 = vld [vmem:[%s336_s1 + $0x10] sm:$0xff]  ;;  %v170_v3 = vld [vmem:[%s336_s1 + $0x8] sm:$0xff]  ;;  %s340_s15 = smov (!%p160_p3, %s256_s15), 1  ;;  %vm177_vm0 = vcmask 261120   ;;  %vm201_vm1 = vcmask 7168  }
   0xe   : > { %193 = vmatpush.msra.mxu0 %v172_v1  ;;  %v169_v4 = vld [vmem:[%s336_s1] sm:$0xff]  ;;  %s261_s23 = sshll.u32 %s340_s15, 3 }
   0xf   : > { %s163_s26 = scalar_lea.vmem %s335_s0, %s261_s23  ;;  %v274_v6 = vld [vmem:[#allocation2] ss:$0 sm:$0xff]  ;;  %s167_s29 = scalar_lea.vmem %s338_s3, %s261_s23 }
  0x10   : > { %194 = vmatpush.msra.mxu0 %v171_v2  ;;  %v168_v5 = vld [vmem:[%s163_s26] sm:$0xff] }
  0x12   : > { %195 = vmatpush.msra.mxu0 %v170_v3 }
  0x14   : > { %196 = vmatpush.msra.mxu0 %v169_v4 }
  0x15   : > { %263 = vmatmul.msk.f32.vlgmr.msra.gmra.mxu0 %vm177_vm0, %v168_v5 }
  0x92   : > { %v198_v7 = vpop.f32.mrf.mxu0 }
  0x93   : > { %v199_v8 = vadd.f32 %v274_v6, %v198_v7 }
  0x95   : > { %202 = vst.msk [vmem:[%s167_s29] sm:$0xff] %vm201_vm1, %v199_v8 }
  0x96 PF: > { %s15_s14 = sadd.s32 1, %s281_s14  }
  0x97   : > { %p12_p4 = scmp.ge.s32.totalorder %s15_s14, 4  }
  0x99   :  { %14 = sbr.rel (!%p12_p4) target bundleno = 3 (0x3), region = 62 }

</bundles_post_ra>
